<compile_context>
chip_gen: v7x
topology: tpu7x:2x2x1
jax: 0.10.0
libtpu: 0.0.40
codegen_flags: <defaults>
</compile_context>

<pallas_src>
import functools

import jax
import jax.numpy as jnp
from jax import lax
from jax.experimental import pallas as pl
from jax.experimental.pallas import tpu as pltpu

LN_EPS = 1e-5


def _gru_cell_kernel(x_ref, h_ref, w_ref, b_ref, ln_ref, out_ref, *, rate, d):
    x = x_ref[...]                       # [tb, D] f32
    h = h_ref[...]                       # [tb, D] f32
    xb = x.astype(jnp.bfloat16)          # MXU operands in bf16
    hb = h.astype(jnp.bfloat16)

    # fused x-side matmul for all three gates: [tb, 3D]; all gate biases added once
    zx = (jnp.dot(xb, w_ref[:, : 3 * d], preferred_element_type=jnp.float32)
          + b_ref[...])
    # fused h-side matmul for r and u: [tb, 2D]
    zh = jnp.dot(hb, w_ref[:, 3 * d: 5 * d], preferred_element_type=jnp.float32)

    # one sigmoid over the packed [tb, 2D] slab -> r | u
    ru = jax.nn.sigmoid(zx[:, : 2 * d] + zh)
    r = ru[:, :d]
    u = ru[:, d:]

    hr = (h * r).astype(jnp.bfloat16)
    h_hat = jnp.tanh(zx[:, 2 * d:]
                     + jnp.dot(hr, w_ref[:, 5 * d:],
                               preferred_element_type=jnp.float32))

    # h_cur = (1-u)*h + u*h_hat  ==  h + u*(h_hat - h)   (one fewer VPU op)
    h_cur = h + u * (h_hat - h)

    # LayerNorm over the last axis (biased variance, like torch.nn.LayerNorm)
    inv_d = 1.0 / d
    mean = jnp.sum(h_cur, axis=-1, keepdims=True) * inv_d
    centered = h_cur - mean
    var = jnp.sum(centered * centered, axis=-1, keepdims=True) * inv_d
    normed = centered * lax.rsqrt(var + LN_EPS)

    # zoneout (eval) fused into the LN affine:
    #   rate*h + (1-rate)*(normed*gamma + beta)
    # = rate*h + normed*((1-rate)*gamma) + (1-rate)*beta
    # gamma/beta scaling is a [1, D] op (free vs [tb, D] work).
    keep = 1.0 - rate
    gamma2 = ln_ref[0:1, :] * keep
    beta2 = ln_ref[1:2, :] * keep
    out_ref[...] = (rate * h + normed * gamma2 + beta2).astype(out_ref.dtype)


def gru_cell(x, h_prev, params, *, dropout_rate, batch_tile=None, donate_h=False):
    """x, h_prev: [B, D] f32. params: packed dict from init_params."""
    B, D = x.shape
    tb = B if batch_tile is None else batch_tile
    assert B % tb == 0, "batch_tile must divide B"

    kernel = functools.partial(_gru_cell_kernel, rate=float(dropout_rate), d=D)

    x_spec = pl.BlockSpec((tb, D), lambda i: (i, 0))
    const = lambda shape: pl.BlockSpec(shape, lambda i: (0, 0))  # VMEM-resident params

    return pl.pallas_call(
        kernel,
        out_shape=jax.ShapeDtypeStruct((B, D), x.dtype),
        grid_spec=pltpu.PrefetchScalarGridSpec(
            num_scalar_prefetch=0,
            grid=(B // tb,),
            in_specs=[
                x_spec,                              # x
                x_spec,                              # h_prev
                const((D, 6 * D)),                   # packed weights (bf16)
                const((1, 3 * D)),                   # packed gate biases
                const((2, D)),                       # gamma / beta
            ],
            out_specs=pl.BlockSpec((tb, D), lambda i: (i, 0)),
        ),
        compiler_params=pltpu.CompilerParams(
            dimension_semantics=("parallel",)),
        # For recurrent drivers: reuse the h_prev buffer for next_h.
        input_output_aliases={1: 0} if donate_h else {},
    )(x, h_prev, params["w_all"], params["b_gates"], params["ln"])


def gru_cell_ref(x, h_prev, params, *, dropout_rate, mxu_dtype=jnp.float32):
    """Pure-JAX reference (eval mode). mxu_dtype=bfloat16 emulates the kernel's
    bf16 MXU operands; float32 is the exact PyTorch-equivalent math."""
    D = x.shape[-1]
    w = params["w_all_f32"].astype(mxu_dtype)
    xm, hm = x.astype(mxu_dtype), h_prev.astype(mxu_dtype)
    b = params["b_gates"]

    zx = jnp.dot(xm, w[:, : 3 * D], preferred_element_type=jnp.float32) + b
    zh = jnp.dot(hm, w[:, 3 * D: 5 * D], preferred_element_type=jnp.float32)
    r = jax.nn.sigmoid(zx[:, :D] + zh[:, :D])
    u = jax.nn.sigmoid(zx[:, D: 2 * D] + zh[:, D: 2 * D])
    hr = (h_prev * r).astype(mxu_dtype)
    h_hat = jnp.tanh(zx[:, 2 * D:]
                     + jnp.dot(hr, w[:, 5 * D:], preferred_element_type=jnp.float32))
    h_cur = (1.0 - u) * h_prev + u * h_hat

    mean = jnp.mean(h_cur, axis=-1, keepdims=True)
    var = jnp.mean((h_cur - mean) ** 2, axis=-1, keepdims=True)
    gamma, beta = params["ln"][0:1, :], params["ln"][1:2, :]
    h_ln = (h_cur - mean) * lax.rsqrt(var + LN_EPS) * gamma + beta
    return dropout_rate * h_prev + (1.0 - dropout_rate) * h_ln


def init_params(key, input_dim, embedding_dim):
    # PyTorch nn.Linear(2*input_dim, embedding_dim): weight [out, 2*in].  We store
    # the transposed weight split into x-block / h-block, then pack all six blocks
    # along the output axis into one [D, 6D] slab (bf16 for the MXU).
    D_in, D_out = input_dim, embedding_dim
    ks = jax.random.split(key, 3)
    scale = 1.0 / jnp.sqrt(2.0 * D_in)

    def lin(k):
        kw, kb = jax.random.split(k)
        w = jax.random.uniform(kw, (2 * D_in, D_out), jnp.float32, -scale, scale)
        b = jax.random.uniform(kb, (1, D_out), jnp.float32, -scale, scale)
        return w[:D_in], w[D_in:], b

    wrx, wrh, br = lin(ks[0])
    wux, wuh, bu = lin(ks[1])
    whx, whh, bh = lin(ks[2])

    w_all_f32 = jnp.concatenate([wrx, wux, whx, wrh, wuh, whh], axis=1)  # [D, 6D]
    return dict(
        w_all=w_all_f32.astype(jnp.bfloat16),
        w_all_f32=w_all_f32,                                   # kept for the reference
        b_gates=jnp.concatenate([br, bu, bh], axis=1),         # [1, 3D]
        ln=jnp.concatenate([jnp.ones((1, D_out), jnp.float32),
                            jnp.zeros((1, D_out), jnp.float32)], axis=0),  # [2, D]
    )


if __name__ == "__main__":
    B, D = 8, 128          # batch, input_dim == embedding_dim (required by the module's math)
    dropout_rate = 0.1

    key = jax.random.PRNGKey(0)
    kx, kh, kp = jax.random.split(key, 3)
    x = jax.random.normal(kx, (B, D), jnp.float32)
    h_prev = jax.random.normal(kh, (B, D), jnp.float32)
    params = init_params(kp, D, D)

    out = gru_cell(x, h_prev, params, dropout_rate=dropout_rate)
    out = jax.block_until_ready(out)
    assert out.shape == (B, D)

    # Tight check vs a reference that emulates the kernel's bf16 MXU operands.
    ref_bf16 = gru_cell_ref(x, h_prev, params, dropout_rate=dropout_rate,
                            mxu_dtype=jnp.bfloat16)
    assert jnp.allclose(out, ref_bf16, atol=5e-3, rtol=5e-3), \
        float(jnp.max(jnp.abs(out - ref_bf16)))

    # Loose check vs the exact f32 PyTorch-equivalent math (bf16 matmul tolerance).
    ref_f32 = gru_cell_ref(x, h_prev, params, dropout_rate=dropout_rate,
                           mxu_dtype=jnp.float32)
    assert jnp.allclose(out, ref_f32, atol=5e-2, rtol=5e-2), \
        float(jnp.max(jnp.abs(out - ref_f32)))

    print("KERNEL_OK")
</pallas_src>

<mosaic_0001>
module attributes {stable_mosaic.version = 11 : i64} {
  func.func @_gru_cell_kernel(%arg0: i32, %arg1: memref<8x128xf32, #tpu.memory_space<vmem>>, %arg2: memref<8x128xf32, #tpu.memory_space<vmem>>, %arg3: memref<128x768xbf16, #tpu.memory_space<vmem>>, %arg4: memref<1x384xf32, #tpu.memory_space<vmem>>, %arg5: memref<2x128xf32, #tpu.memory_space<vmem>>, %arg6: memref<8x128xf32, #tpu.memory_space<vmem>>) attributes {dimension_semantics = [#tpu.dimension_semantics<parallel>], iteration_bounds = array<i64: 1>, scalar_prefetch = 0 : i64, scratch_operands = 0 : i64, tpu.core_type = #tpu.core_type<tc>, window_params = [{transform_indices = @transform_0, window_bounds = array<i64: 8, 128>}, {transform_indices = @transform_1, window_bounds = array<i64: 8, 128>}, {pipeline_mode = #tpu.pipeline_mode<synchronous>, transform_indices = @transform_2, window_bounds = array<i64: 128, 768>}, {pipeline_mode = #tpu.pipeline_mode<synchronous>, transform_indices = @transform_3, window_bounds = array<i64: 1, 384>}, {pipeline_mode = #tpu.pipeline_mode<synchronous>, transform_indices = @transform_4, window_bounds = array<i64: 2, 128>}, {transform_indices = @transform_5, window_bounds = array<i64: 8, 128>}]} {
    %c0 = arith.constant 0 : index
    %c0_0 = arith.constant 0 : index
    %0 = vector.load %arg1[%c0, %c0_0] : memref<8x128xf32, #tpu.memory_space<vmem>>, vector<8x128xf32>
    %c0_1 = arith.constant 0 : index
    %c0_2 = arith.constant 0 : index
    %1 = vector.load %arg2[%c0_1, %c0_2] : memref<8x128xf32, #tpu.memory_space<vmem>>, vector<8x128xf32>
    %2 = arith.truncf %0 : vector<8x128xf32> to vector<8x128xbf16>
    %3 = arith.truncf %1 : vector<8x128xf32> to vector<8x128xbf16>
    %c0_3 = arith.constant 0 : index
    %c0_4 = arith.constant 0 : index
    %4 = vector.load %arg3[%c0_3, %c0_4] : memref<128x768xbf16, #tpu.memory_space<vmem>>, vector<128x384xbf16>
    %cst = arith.constant dense<0.000000e+00> : vector<8x384xf32>
    %5 = tpu.matmul %2, %4, %cst {dimension_numbers = #tpu.dot_dimension_numbers<[1], [0], [0], [1], [0, 0, 1, 1], [], []>} : vector<8x128xbf16>, vector<128x384xbf16>, vector<8x384xf32> -> vector<8x384xf32>
    %c0_5 = arith.constant 0 : index
    %c0_6 = arith.constant 0 : index
    %6 = vector.load %arg4[%c0_5, %c0_6] : memref<1x384xf32, #tpu.memory_space<vmem>>, vector<1x384xf32>
    %7 = vector.broadcast %6 : vector<1x384xf32> to vector<8x384xf32>
    %8 = arith.addf %5, %7 : vector<8x384xf32>
    %c0_7 = arith.constant 0 : index
    %c384 = arith.constant 384 : index
    %9 = vector.load %arg3[%c0_7, %c384] : memref<128x768xbf16, #tpu.memory_space<vmem>>, vector<128x256xbf16>
    %cst_8 = arith.constant dense<0.000000e+00> : vector<8x256xf32>
    %10 = tpu.matmul %3, %9, %cst_8 {dimension_numbers = #tpu.dot_dimension_numbers<[1], [0], [0], [1], [0, 0, 1, 1], [], []>} : vector<8x128xbf16>, vector<128x256xbf16>, vector<8x256xf32> -> vector<8x256xf32>
    %11 = vector.extract_strided_slice %8 {offsets = [0, 0], sizes = [8, 256], strides = [1, 1]} : vector<8x384xf32> to vector<8x256xf32>
    %12 = arith.addf %11, %10 : vector<8x256xf32>
    %13 = arith.negf %12 : vector<8x256xf32>
    %14 = math.exp %13 : vector<8x256xf32>
    %cst_9 = arith.constant 1.000000e+00 : f32
    %15 = vector.broadcast %cst_9 : f32 to vector<8x256xf32>
    %16 = arith.addf %15, %14 : vector<8x256xf32>
    %17 = arith.divf %15, %16 : vector<8x256xf32>
    %18 = vector.extract_strided_slice %17 {offsets = [0, 0], sizes = [8, 128], strides = [1, 1]} : vector<8x256xf32> to vector<8x128xf32>
    %19 = vector.extract_strided_slice %17 {offsets = [0, 128], sizes = [8, 128], strides = [1, 1]} : vector<8x256xf32> to vector<8x128xf32>
    %20 = arith.mulf %1, %18 : vector<8x128xf32>
    %21 = arith.truncf %20 : vector<8x128xf32> to vector<8x128xbf16>
    %22 = vector.extract_strided_slice %8 {offsets = [0, 256], sizes = [8, 128], strides = [1, 1]} : vector<8x384xf32> to vector<8x128xf32>
    %c0_10 = arith.constant 0 : index
    %c640 = arith.constant 640 : index
    %23 = vector.load %arg3[%c0_10, %c640] : memref<128x768xbf16, #tpu.memory_space<vmem>>, vector<128x128xbf16>
    %cst_11 = arith.constant dense<0.000000e+00> : vector<8x128xf32>
    %24 = tpu.matmul %21, %23, %cst_11 {dimension_numbers = #tpu.dot_dimension_numbers<[1], [0], [0], [1], [0, 0, 1, 1], [], []>} : vector<8x128xbf16>, vector<128x128xbf16>, vector<8x128xf32> -> vector<8x128xf32>
    %25 = arith.addf %22, %24 : vector<8x128xf32>
    %26 = math.tanh %25 : vector<8x128xf32>
    %27 = arith.subf %26, %1 : vector<8x128xf32>
    %28 = arith.mulf %19, %27 : vector<8x128xf32>
    %29 = arith.addf %1, %28 : vector<8x128xf32>
    %cst_12 = arith.constant dense<0.000000e+00> : vector<8xf32>
    %30 = vector.multi_reduction <add>, %29, %cst_12 [1] : vector<8x128xf32> to vector<8xf32>
    %31 = vector.shape_cast %30 : vector<8xf32> to vector<8x1xf32>
    %cst_13 = arith.constant 7.812500e-03 : f32
    %32 = vector.broadcast %cst_13 : f32 to vector<8x1xf32>
    %33 = arith.mulf %31, %32 : vector<8x1xf32>
    %34 = vector.broadcast %33 : vector<8x1xf32> to vector<8x128xf32>
    %35 = arith.subf %29, %34 : vector<8x128xf32>
    %36 = arith.mulf %35, %35 : vector<8x128xf32>
    %cst_14 = arith.constant dense<0.000000e+00> : vector<8xf32>
    %37 = vector.multi_reduction <add>, %36, %cst_14 [1] : vector<8x128xf32> to vector<8xf32>
    %38 = vector.shape_cast %37 : vector<8xf32> to vector<8x1xf32>
    %cst_15 = arith.constant 7.812500e-03 : f32
    %39 = vector.broadcast %cst_15 : f32 to vector<8x1xf32>
    %40 = arith.mulf %38, %39 : vector<8x1xf32>
    %cst_16 = arith.constant 9.99999974E-6 : f32
    %41 = vector.broadcast %cst_16 : f32 to vector<8x1xf32>
    %42 = arith.addf %40, %41 : vector<8x1xf32>
    %43 = math.rsqrt %42 : vector<8x1xf32>
    %44 = vector.broadcast %43 : vector<8x1xf32> to vector<8x128xf32>
    %45 = arith.mulf %35, %44 : vector<8x128xf32>
    %c0_17 = arith.constant 0 : index
    %c0_18 = arith.constant 0 : index
    %46 = vector.load %arg5[%c0_17, %c0_18] : memref<2x128xf32, #tpu.memory_space<vmem>>, vector<1x128xf32>
    %cst_19 = arith.constant 0.899999976 : f32
    %47 = vector.broadcast %cst_19 : f32 to vector<1x128xf32>
    %48 = arith.mulf %46, %47 : vector<1x128xf32>
    %c1 = arith.constant 1 : index
    %c0_20 = arith.constant 0 : index
    %49 = vector.load %arg5[%c1, %c0_20] : memref<2x128xf32, #tpu.memory_space<vmem>>, vector<1x128xf32>
    %cst_21 = arith.constant 0.899999976 : f32
    %50 = vector.broadcast %cst_21 : f32 to vector<1x128xf32>
    %51 = arith.mulf %49, %50 : vector<1x128xf32>
    %cst_22 = arith.constant 1.000000e-01 : f32
    %52 = vector.broadcast %cst_22 : f32 to vector<8x128xf32>
    %53 = arith.mulf %52, %1 : vector<8x128xf32>
    %54 = vector.broadcast %48 : vector<1x128xf32> to vector<8x128xf32>
    %55 = arith.mulf %45, %54 : vector<8x128xf32>
    %56 = arith.addf %53, %55 : vector<8x128xf32>
    %57 = vector.broadcast %51 : vector<1x128xf32> to vector<8x128xf32>
    %58 = arith.addf %56, %57 : vector<8x128xf32>
    %c0_23 = arith.constant 0 : index
    %c0_24 = arith.constant 0 : index
    %59 = vector.load %arg6[%c0_23, %c0_24] : memref<8x128xf32, #tpu.memory_space<vmem>>, vector<8x128xf32>
    tpu.vector_store %arg6[%c0_23, %c0_24], %58 {strides = array<i32>} : memref<8x128xf32, #tpu.memory_space<vmem>>, vector<8x128xf32>,
    return
  }
  func.func @transform_0(%arg0: i32) -> (i32, i32) {
    %c0_i32 = arith.constant 0 : i32
    %c0_i32_0 = arith.constant 0 : i32
    return %arg0, %c0_i32 : i32, i32
  }
  func.func @transform_1(%arg0: i32) -> (i32, i32) {
    %c0_i32 = arith.constant 0 : i32
    %c0_i32_0 = arith.constant 0 : i32
    return %arg0, %c0_i32 : i32, i32
  }
  func.func @transform_2(%arg0: i32) -> (i32, i32) {
    %c0_i32 = arith.constant 0 : i32
    %c0_i32_0 = arith.constant 0 : i32
    %c0_i32_1 = arith.constant 0 : i32
    return %c0_i32, %c0_i32_0 : i32, i32
  }
  func.func @transform_3(%arg0: i32) -> (i32, i32) {
    %c0_i32 = arith.constant 0 : i32
    %c0_i32_0 = arith.constant 0 : i32
    %c0_i32_1 = arith.constant 0 : i32
    return %c0_i32, %c0_i32_0 : i32, i32
  }
  func.func @transform_4(%arg0: i32) -> (i32, i32) {
    %c0_i32 = arith.constant 0 : i32
    %c0_i32_0 = arith.constant 0 : i32
    %c0_i32_1 = arith.constant 0 : i32
    return %c0_i32, %c0_i32_0 : i32, i32
  }
  func.func @transform_5(%arg0: i32) -> (i32, i32) {
    %c0_i32 = arith.constant 0 : i32
    %c0_i32_0 = arith.constant 0 : i32
    return %arg0, %c0_i32 : i32, i32
  }
}

</mosaic_0001>

<bundles_post_ra>
// kernel: tpu_custom_call.1
= control target key start
LH: loop header
LB: loop body
LE: loop exit
PB: predicated region body
PF: predicated region fallthrough
CT: control target
= control target key end

     0   :  { %10 = vsyncpa [#allocation3], 0  ;;  %s1047_s0 = inlined_call_operand.hbm [shape: f32[8,128], index: 0, kind: input, shape index: {}]   ;;  %s1048_s1 = inlined_call_operand.hbm [shape: f32[8,128], index: 1, kind: input, shape index: {}]   ;;  %s1049_s2 = inlined_call_operand.hbm [shape: bf16[128,768], index: 2, kind: input, shape index: {}]   ;;  %s1050_s3 = inlined_call_operand.vmem [shape: f32[1,384], index: 3, kind: input, shape index: {}]   ;;  %s1051_s4 = inlined_call_operand.vmem [shape: f32[2,128], index: 4, kind: input, shape index: {}]   ;;  %s1052_s5 = inlined_call_operand.hbm [shape: f32[8,128], index: 5, kind: output, shape index: {}]  }
   0x1   :  { %11 = vsyncpa [#allocation6], 0 }
   0x2   :  { %12 = vsyncpa [#allocation4], 0  ;;  %s925_s18 = smov [#allocation5]   ;;  %s926_s20 = smov [#allocation2]  }
   0x3   :  { %s29_s19 = sshll.u32 %s925_s18, 4  ;;  %s19_s21 = sshll.u32 %s926_s20, 4  ;;  %s30_s19 = int_to_ptr.vmem [resolvable:$true] %s29_s19  ;;  %s20_s21 = int_to_ptr.vmem [resolvable:$true] %s19_s21 }
   0x4   :  { %s831_s24 = scalar_lea.hbm %s1048_s1, 128 }
   0x5   :  { %p832_p0 = scmp.ne.s32.totalorder %s1048_s1, %s831_s24  ;;  %p835_p1 = scmp.lt.u32.totalorder %s831_s24, %s1048_s1 }
   0x7   :  { %p837_p2 = pnand %p835_p1, %p832_p0 }
   0x9   :  { %840 = shalt.err (!%p837_p2)
}
   0xa   :  { %s841_s29 = scalar_lea.vmem %s30_s19, 128  ;;  %p846_p4 = scmp.lt.s32.totalorder %s30_s19, %s30_s19 }
   0xb   :  { %p842_p3 = scmp.ne.s32.totalorder %s30_s19, %s841_s29  ;;  %p847_p5 = scmp.lt.s32.totalorder %s841_s29, %s841_s29 }
   0xd   :  { %p848_p6 = por %p847_p5, %p846_p4 }
   0xf   :  { %p849_p7 = pnand %p848_p6, %p842_p3 }
  0x11   :  { %852 = shalt.err (!%p849_p7)
}
  0x12   :  { %32 = dma.hbm_to_vmem [thread:$0]  %s1048_s1, 128, %s30_s19, [#allocation6]  }
  0x13   :  { %s853_s9 = scalar_lea.hbm %s1047_s0, 128 }
  0x14   :  { %p854_p8 = scmp.ne.s32.totalorder %s1047_s0, %s853_s9  ;;  %p857_p9 = scmp.lt.u32.totalorder %s853_s9, %s1047_s0 }
  0x16   :  { %p859_p10 = pnand %p857_p9, %p854_p8 }
  0x18   :  { %862 = shalt.err (!%p859_p10)
}
  0x19   :  { %s863_s14 = scalar_lea.vmem %s20_s21, 128  ;;  %p868_p12 = scmp.lt.s32.totalorder %s20_s21, %s20_s21 }
  0x1a   :  { %p864_p11 = scmp.ne.s32.totalorder %s20_s21, %s863_s14  ;;  %p869_p13 = scmp.lt.s32.totalorder %s863_s14, %s863_s14 }
  0x1c   :  { %p870_p0 = por %p869_p13, %p868_p12 }
  0x1e   :  { %p871_p1 = pnand %p870_p0, %p864_p11 }
  0x20   :  { %874 = shalt.err (!%p871_p1)
}
  0x21   :  { %22 = dma.hbm_to_vmem [thread:$0]  %s1047_s0, 128, %s20_s21, [#allocation3]  }
  0x22   :  { %s927_s16 = smov [#allocation7]   ;;  %s875_s20 = scalar_lea.hbm %s1049_s2, 6144 }
  0x23   :  { %s38_s17 = sshll.u32 %s927_s16, 4  ;;  %p876_p2 = scmp.ne.s32.totalorder %s1049_s2, %s875_s20  ;;  %s39_s17 = int_to_ptr.vmem [resolvable:$true] %s38_s17 }
  0x24   :  { %p879_p3 = scmp.lt.u32.totalorder %s875_s20, %s1049_s2 }
  0x26   :  { %p881_p4 = pnand %p879_p3, %p876_p2 }
  0x28   :  { %884 = shalt.err (!%p881_p4)
}
  0x29   :  { %s885_s26 = scalar_lea.vmem %s39_s17, 6144  ;;  %p890_p6 = scmp.lt.s32.totalorder %s39_s17, %s39_s17 }
  0x2a   :  { %p886_p5 = scmp.ne.s32.totalorder %s39_s17, %s885_s26  ;;  %p891_p7 = scmp.lt.s32.totalorder %s885_s26, %s885_s26 }
  0x2c   :  { %p892_p8 = por %p891_p7, %p890_p6 }
  0x2e   :  { %p893_p9 = pnand %p892_p8, %p886_p5 }
  0x30   :  { %896 = shalt.err (!%p893_p9)
}
  0x31   :  { %s928_s0 = smov 384   ;;  %s929_s21 = smov 24  }
  0x32   :  { %44 = dma.hbm_to_vmem [thread:$0]  %s1049_s2, 6144, %s39_s17, [#allocation6], %s928_s0, %s928_s0, %s929_s21  }
  0x33   :  { %919 = dma.done.wait [#allocation3], 128  }
  0x34   :  { %920 = vsyncadd [#allocation3], 4294967168 }
  0x35   :  { %921 = dma.done.wait [#allocation6], 6272  }
  0x36   :  { %922 = vsyncadd [#allocation6], 4294961024  ;;  %v930_v0 = vmov 0   ;;  %v931_v1 = vmov 0.0   ;;  %v755_v2 = vld [vmem:[#allocation7 + $0x4] ss:$24 sps:$4 sm:$0xff]   ;;  %v97_v54 = vlaneseq }
  0x37   :  { %272 = vmatprep.mubr.bf16.mxu0 %v930_v0  ;;  %695 = vmatprep.subr.bf16.mxu1 %v931_v1  ;;  %v757_v3 = vld [vmem:[#allocation7] ss:$24 sps:$4 sm:$0xff]   ;;  %v758_v4 = vld [vmem:[#allocation7 + $0x34] ss:$24 sps:$4 sm:$0xff]   ;;  %v760_v5 = vld [vmem:[#allocation7 + $0x30] ss:$24 sps:$4 sm:$0xff]  }
  0x38   :  { %240 = vmatprep.subr.bf16.mxu0 %v755_v2  ;;  %v761_v6 = vld [vmem:[#allocation7 + $0x64] ss:$24 sps:$4 sm:$0xff]   ;;  %v763_v7 = vld [vmem:[#allocation7 + $0x60] ss:$24 sps:$4 sm:$0xff]   ;;  %v764_v8 = vld [vmem:[#allocation7 + $0x94] ss:$24 sps:$4 sm:$0xff]  }
  0x39   :  { %241 = vmatpush1.bf16.msra.mxu0 %v757_v3  ;;  %v766_v9 = vld [vmem:[#allocation7 + $0x90] ss:$24 sps:$4 sm:$0xff]   ;;  %v767_v10 = vld [vmem:[#allocation7 + $0xc4] ss:$24 sps:$4 sm:$0xff]   ;;  %v769_v11 = vld [vmem:[#allocation7 + $0xc0] ss:$24 sps:$4 sm:$0xff]  }
  0x3a   :  { %242 = vmatprep.subr.bf16.mxu0 %v758_v4  ;;  %v770_v12 = vld [vmem:[#allocation7 + $0xf4] ss:$24 sps:$4 sm:$0xff]   ;;  %v772_v13 = vld [vmem:[#allocation7 + $0xf0] ss:$24 sps:$4 sm:$0xff]   ;;  %v773_v14 = vld [vmem:[#allocation7 + $0x124] ss:$24 sps:$4 sm:$0xff]  }
  0x3b   :  { %v775_v15 = vld [vmem:[#allocation7 + $0x120] ss:$24 sps:$4 sm:$0xff]   ;;  %v776_v17 = vld [vmem:[#allocation7 + $0x154] ss:$24 sps:$4 sm:$0xff]   ;;  %v778_v19 = vld [vmem:[#allocation7 + $0x150] ss:$24 sps:$4 sm:$0xff]  }
  0x3c   :  { %v803_v16 = vld [vmem:[#allocation7 + $0x8] ss:$24 sps:$4 sm:$0xff]   ;;  %v804_v18 = vld [vmem:[#allocation7 + $0x38] ss:$24 sps:$4 sm:$0xff]   ;;  %v779_v23 = vld [vmem:[#allocation7 + $0xc] ss:$24 sps:$4 sm:$0xff]  }
  0x3d   :  { %243 = vmatpush1.bf16.msra.mxu0 %v760_v5  ;;  %696 = vmatpush3.bf16.msra.mxu1 %v803_v16  ;;  %v781_v20 = vld [vmem:[#allocation7 + $0x10] ss:$24 sps:$4 sm:$0xff]   ;;  %v784_v25 = vld [vmem:[#allocation7 + $0x40] ss:$24 sps:$4 sm:$0xff]   ;;  %v782_v27 = vld [vmem:[#allocation7 + $0x3c] ss:$24 sps:$4 sm:$0xff]  }
  0x3e   :  { %244 = vmatprep.subr.bf16.mxu0 %v761_v6  ;;  %697 = vmatprep.subr.bf16.mxu1 %v931_v1  ;;  %v59_v21 = vld [vmem:[#allocation2] sm:$0xff]  ;;  %v805_v22 = vld [vmem:[#allocation7 + $0x68] ss:$24 sps:$4 sm:$0xff]   ;;  %v785_v30 = vld [vmem:[#allocation7 + $0x6c] ss:$24 sps:$4 sm:$0xff]   ;;  %vm932_vm0 = vmmov 0  }
  0x3f   :  { %v61_v24 = vpack.c.bf16 %v59_v21, %v59_v21  ;;  %v806_v26 = vld [vmem:[#allocation7 + $0x98] ss:$24 sps:$4 sm:$0xff]   ;;  %v807_v29 = vld [vmem:[#allocation7 + $0xc8] ss:$24 sps:$4 sm:$0xff]   ;;  %v788_v33 = vld [vmem:[#allocation7 + $0x9c] ss:$24 sps:$4 sm:$0xff]   ;;  %711 = vmatprep.mubr.msk.bf16.mxu1 %vm932_vm0, %v931_v1 }
  0x40   :  { %v787_v28 = vld [vmem:[#allocation7 + $0x70] ss:$24 sps:$4 sm:$0xff]   ;;  %v790_v31 = vld [vmem:[#allocation7 + $0xa0] ss:$24 sps:$4 sm:$0xff]   ;;  %v791_v36 = vld [vmem:[#allocation7 + $0xcc] ss:$24 sps:$4 sm:$0xff]  }
  0x41   :  { %245 = vmatpush1.bf16.msra.mxu0 %v763_v7  ;;  %698 = vmatpush3.bf16.msra.mxu1 %v804_v18  ;;  %v808_v32 = vld [vmem:[#allocation7 + $0xf8] ss:$24 sps:$4 sm:$0xff]   ;;  %v809_v35 = vld [vmem:[#allocation7 + $0x128] ss:$24 sps:$4 sm:$0xff]   ;;  %v794_v39 = vld [vmem:[#allocation7 + $0xfc] ss:$24 sps:$4 sm:$0xff]  }
  0x42   :  { %246 = vmatprep.subr.bf16.mxu0 %v764_v8  ;;  %699 = vmatprep.subr.bf16.mxu1 %v931_v1  ;;  %v793_v34 = vld [vmem:[#allocation7 + $0xd0] ss:$24 sps:$4 sm:$0xff]   ;;  %v796_v37 = vld [vmem:[#allocation7 + $0x100] ss:$24 sps:$4 sm:$0xff]   ;;  %v797_v41 = vld [vmem:[#allocation7 + $0x12c] ss:$24 sps:$4 sm:$0xff]  }
  0x43   :  { %v810_v38 = vld [vmem:[#allocation7 + $0x158] ss:$24 sps:$4 sm:$0xff]   ;;  %v800_v43 = vld [vmem:[#allocation7 + $0x15c] ss:$24 sps:$4 sm:$0xff]   ;;  %v98_v55 = vshrl.u32 %v97_v54, 7  ;;  %s933_s8 = smov [#allocation8]  }
  0x44   :  { %v799_v40 = vld [vmem:[#allocation7 + $0x130] ss:$24 sps:$4 sm:$0xff]   ;;  %v802_v42 = vld [vmem:[#allocation7 + $0x160] ss:$24 sps:$4 sm:$0xff]   ;;  %v811_v46 = vld [vmem:[#allocation7 + $0x14] ss:$24 sps:$4 sm:$0xff]  }
  0x45   :  { %247 = vmatpush1.bf16.msra.mxu0 %v766_v9  ;;  %700 = vmatpush3.bf16.msra.mxu1 %v805_v22  ;;  %v1009_v44 = vld [vmem:[#allocation5] sm:$0xff]  ;;  %v813_v48 = vld [vmem:[#allocation7 + $0x74] ss:$24 sps:$4 sm:$0xff]   ;;  %v99_v56 = vsub.s32 0, %v98_v55  ;;  %v95_v57 = vld [vmem:[%s1050_s3] sm:$0x7] }
  0x46   :  { %248 = vmatprep.subr.bf16.mxu0 %v767_v10  ;;  %701 = vmatprep.subr.bf16.mxu1 %v931_v1  ;;  %v62_v45 = vpack.c.bf16 %v1009_v44, %v1009_v44  ;;  %v812_v47 = vld [vmem:[#allocation7 + $0x44] ss:$24 sps:$4 sm:$0xff]   ;;  %v815_v50 = vld [vmem:[#allocation7 + $0xd4] ss:$24 sps:$4 sm:$0xff]   ;;  %v103_v6 = vsub.s32 1, %v98_v55  ;;  %v107_v10 = vsub.s32 2, %v98_v55 }
  0x47   :  { %v814_v49 = vld [vmem:[#allocation7 + $0xa4] ss:$24 sps:$4 sm:$0xff]   ;;  %v817_v52 = vld [vmem:[#allocation7 + $0x134] ss:$24 sps:$4 sm:$0xff]   ;;  %v100_v58 = vrot.slane %v95_v57, %v99_v56  ;;  %s617_s9 = sshll.u32 %s933_s8, 4  ;;  %s618_s9 = int_to_ptr.vmem [resolvable:$true] %s617_s9 }
  0x48   :  { %v816_v51 = vld [vmem:[#allocation7 + $0x104] ss:$24 sps:$4 sm:$0xff]   ;;  %v104_v7 = vrot.slane %v95_v57, %v103_v6  ;;  %s897_s10 = scalar_lea.vmem %s618_s9, 128  ;;  %p902_p11 = scmp.lt.s32.totalorder %s618_s9, %s618_s9 }
  0x49   :  { %249 = vmatpush1.bf16.msra.mxu0 %v769_v11  ;;  %702 = vmatpush3.bf16.msra.mxu1 %v806_v26  ;;  %v818_v53 = vld [vmem:[#allocation7 + $0x164] ss:$24 sps:$4 sm:$0xff]   ;;  %v108_v11 = vrot.slane %v95_v57, %v107_v10  ;;  %p898_p10 = scmp.ne.s32.totalorder %s618_s9, %s897_s10  ;;  %p903_p12 = scmp.lt.s32.totalorder %s897_s10, %s897_s10 }
  0x4a   :  { %250 = vmatprep.subr.bf16.mxu0 %v770_v12  ;;  %703 = vmatprep.subr.bf16.mxu1 %v931_v1 }
  0x4b   :  { %p904_p13 = por %p903_p12, %p902_p11 }
  0x4d   :  { %251 = vmatpush1.bf16.msra.mxu0 %v772_v13  ;;  %704 = vmatpush3.bf16.msra.mxu1 %v807_v29  ;;  %p905_p0 = pnand %p904_p13, %p898_p10 }
  0x4e   :  { %252 = vmatprep.subr.bf16.mxu0 %v773_v14  ;;  %705 = vmatprep.subr.bf16.mxu1 %v931_v1 }
  0x51   :  { %253 = vmatpush1.bf16.msra.mxu0 %v775_v15  ;;  %706 = vmatpush3.bf16.msra.mxu1 %v808_v32 }
  0x52   :  { %254 = vmatprep.subr.bf16.mxu0 %v776_v17  ;;  %707 = vmatprep.subr.bf16.mxu1 %v931_v1 }
  0x55   :  { %255 = vmatpush1.bf16.msra.mxu0 %v778_v19  ;;  %708 = vmatpush3.bf16.msra.mxu1 %v809_v35 }
  0x56   :  { %417 = vmatprep.subr.bf16.mxu0 %v781_v20  ;;  %709 = vmatprep.subr.bf16.mxu1 %v931_v1 }
  0x58   :  { %273 = vmatmul.mubr.bf16.vlgmr.msra.gmra.mrb[0].mxu0 %v61_v24 }
  0x59   :  { %418 = vmatpush1.bf16.msra.mxu0 %v779_v23  ;;  %449 = vmatprep.mubr.bf16.mxu0 %v930_v0 }
  0x5a   :  { %419 = vmatprep.subr.bf16.mxu0 %v784_v25  ;;  %710 = vmatpush3.bf16.msra.mxu1 %v810_v38  ;;  %v598_v38 = vmul.f32 0.1, %v1009_v44 }
  0x5b   :  { %715 = vmatprep.subr.bf16.mxu1 %v931_v1 }
  0x5d   :  { %420 = vmatpush1.bf16.msra.mxu0 %v782_v27  ;;  %712 = vmatmul.mubr.bf16.vlgmr.msra.gmra.mrb[0].mxu1 %v61_v24 }
  0x5e   :  { %421 = vmatprep.subr.bf16.mxu0 %v787_v28  ;;  %716 = vmatpush3.bf16.msra.mxu1 %v811_v46 }
  0x5f   :  { %731 = vmatprep.mubr.msk.bf16.mxu1 %vm932_vm0, %v931_v1  ;;  %717 = vmatprep.subr.bf16.mxu1 %v931_v1 }
  0x61   :  { %422 = vmatpush1.bf16.msra.mxu0 %v785_v30 }
  0x62   :  { %423 = vmatprep.subr.bf16.mxu0 %v790_v31  ;;  %718 = vmatpush3.bf16.msra.mxu1 %v812_v47  ;;  %v594_v31 = vld [vmem:[%s1051_s4] sm:$0x1] }
  0x63   :  { %719 = vmatprep.subr.bf16.mxu1 %v931_v1  ;;  %v595_v32 = vmul.f32 0.9, %v594_v31 }
  0x65   :  { %424 = vmatpush1.bf16.msra.mxu0 %v788_v33  ;;  %v596_v33 = vld [vmem:[%s1051_s4 + $0x1] sm:$0x1]  ;;  %v602_v35 = vrot.slane %v595_v32, %v99_v56 }
  0x66   :  { %425 = vmatprep.subr.bf16.mxu0 %v793_v34  ;;  %720 = vmatpush3.bf16.msra.mxu1 %v813_v48  ;;  %v597_v34 = vmul.f32 0.9, %v596_v33 }
  0x67   :  { %721 = vmatprep.subr.bf16.mxu1 %v931_v1 }
  0x69   :  { %426 = vmatpush1.bf16.msra.mxu0 %v791_v36 }
  0x6a   :  { %427 = vmatprep.subr.bf16.mxu0 %v796_v37  ;;  %722 = vmatpush3.bf16.msra.mxu1 %v814_v49 }
  0x6b   :  { %723 = vmatprep.subr.bf16.mxu1 %v931_v1 }
  0x6d   :  { %428 = vmatpush1.bf16.msra.mxu0 %v794_v39 }
  0x6e   :  { %429 = vmatprep.subr.bf16.mxu0 %v799_v40  ;;  %724 = vmatpush3.bf16.msra.mxu1 %v815_v50  ;;  %v608_v40 = vrot.slane %v597_v34, %v99_v56 }
  0x6f   :  { %725 = vmatprep.subr.bf16.mxu1 %v931_v1 }
  0x71   :  { %430 = vmatpush1.bf16.msra.mxu0 %v797_v41 }
  0x72   :  { %431 = vmatprep.subr.bf16.mxu0 %v802_v42  ;;  %726 = vmatpush3.bf16.msra.mxu1 %v816_v51 }
  0x73   :  { %727 = vmatprep.subr.bf16.mxu1 %v931_v1 }
  0x75   :  { %432 = vmatpush1.bf16.msra.mxu0 %v800_v43 }
  0x76   :  { %728 = vmatpush3.bf16.msra.mxu1 %v817_v52 }
  0x77   :  { %729 = vmatprep.subr.bf16.mxu1 %v931_v1 }
  0x78   :  { %450 = vmatmul.mubr.bf16.vlgmr.msra.gmra.mrb[0].mxu0 %v62_v45 }
  0x7a   :  { %730 = vmatpush3.bf16.msra.mxu1 %v818_v53 }
 0x14b   :  { %v451_v59 = vpop.f32.mrb[0].mxu0 }
 0x14c   :  { %v735_v60 = vadd.f32 %v451_v59, %v100_v58  ;;  %v453_v61 = vpop.f32.mrb[1].mxu0 }
 0x14d   :  { %v455_v62 = vpop.f32.mrb[2].mxu0  ;;  %v736_v8 = vadd.f32 %v453_v61, %v104_v7 }
 0x14e   :  { %v667_v63 = vmul.f32 -1.442695, %v735_v60  ;;  %v456_v0 = vpop.f32.mrb[3].mxu0 }
 0x14f   :  { %v668_v9 = vmul.f32 -1.442695, %v736_v8 }
 0x150   :  { %819 = vpow2.f32 %v667_v63 }
 0x15a   :  { %v820_v2 = vpop.eup %819 }
 0x15b   :  { %v466_v3 = vadd.f32 1.0, %v820_v2 }
 0x15d   :  { %821 = vrcp.f32 %v466_v3 }
 0x15e   :  { %823 = vpow2.f32 %v668_v9 }
 0x167   :  { %v822_v1 = vpop.eup %821 }
 0x168   :  { %v472_v4 = vmul.f32 %v822_v1, %v1009_v44  ;;  %v824_v12 = vpop.eup %823 }
 0x169   :  { %v467_v14 = vadd.f32 1.0, %v824_v12 }
 0x16a   :  { %v473_v5 = vpack.c.bf16 %v472_v4, %v472_v4 }
 0x16c   :  { %732 = vmatmul.mubr.bf16.vlgmr.msra.gmra.mrb[0].mxu1 %v473_v5 }
 0x23f   :  { %v572_v13 = vpop.f32.mrb[0].mxu1 }
 0x240   :  { %v737_v15 = vadd.f32 %v572_v13, %v108_v11  ;;  %v733_v16 = vpop.f32.mrb[1].mxu1 }
 0x241   :  { %v575_v17 = vpop.f32.mrb[2].mxu1 }
 0x242   :  { %825 = vtanh.f32 %v737_v15  ;;  %v734_v18 = vpop.f32.mrb[3].mxu1 }
 0x243   :  { %827 = vrcp.f32 %v467_v14 }
 0x24c   :  { %v826_v19 = vpop.eup %825 }
 0x24d   :  { %v580_v20 = vsub.f32 %v826_v19, %v1009_v44  ;;  %v828_v21 = vpop.eup %827 }
 0x24f   :  { %v581_v22 = vmul.f32 %v828_v21, %v580_v20 }
 0x251   :  { %v582_v23 = vadd.f32 %v581_v22, %v1009_v44 }
 0x253   :  { %583 = vadd.xlane.f32.xlu0 %v582_v23 }
 0x2e0   :  { %v584_v24 = vpop.xlane.xlu0 %583 }
 0x2e1   :  { %v585_v25 = vmul.f32 0.0078125, %v584_v24 }
 0x2e3   :  { %v586_v26 = vsub.f32 %v582_v23, %v585_v25 }
 0x2e5   :  { %v587_v27 = vmul.f32 %v586_v26, %v586_v26 }
 0x2e7   :  { %588 = vadd.xlane.f32.xlu0 %v587_v27 }
 0x374   :  { %v589_v28 = vpop.xlane.xlu0 %588 }
 0x375   :  { %v590_v29 = vmul.f32 0.0078125, %v589_v28 }
 0x377   :  { %v591_v30 = vadd.f32 1e-05, %v590_v29 }
 0x379   :  { %829 = vrsqrt.f32 %v591_v30 }
 0x383   :  { %v830_v36 = vpop.eup %829 }
 0x384   :  { %v593_v37 = vmul.f32 %v830_v36, %v586_v26 }
 0x386   :  { %v603_v39 = vmul.f32 %v602_v35, %v593_v37 }
 0x388   :  { %v604_v41 = vadd.f32 %v603_v39, %v598_v38 }
 0x38a   :  { %v609_v42 = vadd.f32 %v608_v40, %v604_v41 }
 0x38c   :  { %610 = vst [vmem:[#allocation8] sm:$0xff] %v609_v42 }
 0x38d   :  { %908 = shalt.err (!%p905_p0)
}
 0x38e   :  { %s909_s12 = scalar_lea.hbm %s1052_s5, 128 }
 0x38f   :  { %p910_p1 = scmp.ne.s32.totalorder %s1052_s5, %s909_s12  ;;  %p913_p2 = scmp.lt.u32.totalorder %s909_s12, %s1052_s5 }
 0x391   :  { %p915_p3 = pnand %p913_p2, %p910_p1 }
 0x393   :  { %918 = shalt.err (!%p915_p3)
}
 0x394   :  { %620 = dma.vmem_to_hbm [thread:$0]  %s618_s9, 128, %s1052_s5, [#allocation4]  }
 0x395   :  { %923 = dma.done.wait [#allocation4], 128  }
 0x396   :  { %924 = vsyncadd [#allocation4], 4294967168 }
 0x397   :  { %624 = vsyncpa [#allocation3], 1 }
 0x398   :  { %625 = vsyncpa [#allocation6], 1 }
 0x399   :  { %626 = vsyncpa [#allocation4], 1 }

</bundles_post_ra>
